<compile_context>
chip_gen: v7x
topology: tpu7x:2x2x1
jax: 0.10.0
libtpu: 0.0.40
codegen_flags: <defaults>
</compile_context>

<pallas_src>
import jax
import jax.numpy as jnp
import numpy as np
from jax.experimental import pallas as pl
from jax.experimental.pallas import tpu as pltpu


def _round_up(x, m):
    return ((x + m - 1) // m) * m


def _vmem_cap_bytes():
    """Generation-aware VMEM cap (85% of physical; v7x has only 64 MiB/TC)."""
    try:
        cap = int(pltpu.get_tpu_info().vmem_capacity_bytes)
    except Exception:
        cap = 64 << 20            # conservative fallback (v7x per-TC size)
    return int(0.85 * cap)


# ---------------------------------------------------------------------------
# Kernel
# ---------------------------------------------------------------------------
def _head_kernel(x_ref, wp_ref, m1_ref, m2_ref, b1_ref, b2_ref, b3_ref, out_ref):
    x = x_ref[...]                                                   # [TB, H]

    # t lanes: [ x@(wh@w1) | x@(wh@w2h) | x@(wh@w3h) | 0...0 ]      (hidden Linear folded)
    t = jnp.dot(x, wp_ref[...], preferred_element_type=jnp.float32)  # [TB, 128]

    # lanes 0:L1 now hold o1 (bias slab is zero elsewhere)
    s1 = t + b1_ref[...]

    # o1-contribution to levels 2 and 3 (m1 has zero rows/cols elsewhere)
    u = jnp.dot(s1.astype(m1_ref.dtype), m1_ref[...],
                preferred_element_type=jnp.float32)

    # lanes L1:L1+L2 now hold o2
    s2 = s1 + u + b2_ref[...]

    # o2-contribution to level 3
    v = jnp.dot(s2.astype(m2_ref.dtype), m2_ref[...],
                preferred_element_type=jnp.float32)

    # lanes L1+L2:Ltot now hold o3; remaining lanes are exactly zero.
    out_ref[...] = (s2 + v + b3_ref[...]).astype(out_ref.dtype)      # one unmasked store


# ---------------------------------------------------------------------------
# Wrapper
# ---------------------------------------------------------------------------
def iddr_classifier_head(cls_vec, params, *, tb=512, compute_dtype=jnp.bfloat16):
    """Runs the cascaded classifier head in a single Pallas kernel.

    cls_vec: [B, H] float32 (CLS-token hidden states)
    params : dict of weights (see init_params)
    returns: dict {'classifier_level_1/2/3': [B, Lk]} float32 logits

    Note: the hidden-Linear fold is only valid in eval mode (Dropout identity).
    """
    B, H = cls_vec.shape
    L1 = params['b1'].shape[-1]
    L2 = params['b2'].shape[-1]
    L3 = params['b3'].shape[-1]
    Ltot = L1 + L2 + L3
    Lp = _round_up(Ltot, 128)            # lane-dense packed output width
    f32 = jnp.float32
    wd = jnp.dtype(compute_dtype)

    # --- fold the hidden Linear into the level weights (eval mode, exact) ------
    wh = params['wh'].astype(f32)
    bh = params['bh'].astype(f32)
    w1f = wh @ params['w1']                                   # [H, L1]
    w2hf = wh @ params['w2h']                                 # [H, L2]
    w3hf = wh @ params['w3h']                                 # [H, L3]
    b1f = bh @ params['w1'] + params['b1']                    # [1, L1]
    b2f = bh @ params['w2h'] + params['b2']                   # [1, L2]
    b3f = bh @ params['w3h'] + params['b3']                   # [1, L3]

    # --- lane-aligned weight slabs (no in-kernel slicing / concatenation) ------
    wp = jnp.zeros((H, Lp), f32)
    wp = wp.at[:, :L1].set(w1f).at[:, L1:L1 + L2].set(w2hf) \
           .at[:, L1 + L2:Ltot].set(w3hf)
    m1 = jnp.zeros((Lp, Lp), f32)
    m1 = m1.at[:L1, L1:L1 + L2].set(params['w21']) \
           .at[:L1, L1 + L2:Ltot].set(params['w31'])
    m2 = jnp.zeros((Lp, Lp), f32)
    m2 = m2.at[L1:L1 + L2, L1 + L2:Ltot].set(params['w32'])

    b1s = jnp.zeros((1, Lp), f32).at[:, :L1].set(b1f)
    b2s = jnp.zeros((1, Lp), f32).at[:, L1:L1 + L2].set(b2f)
    b3s = jnp.zeros((1, Lp), f32).at[:, L1 + L2:Ltot].set(b3f)

    wp = wp.astype(wd)
    m1 = m1.astype(wd)
    m2 = m2.astype(wd)
    x = cls_vec.astype(wd)               # bf16 LHS halves x-tile DMA bytes

    # --- batch tiling -----------------------------------------------------------
    b_pad8 = _round_up(max(B, 1), 8)
    TB = min(_round_up(tb, 8), b_pad8)
    # ensure >= 2 grid steps whenever possible so v7x's two TCs both get work
    if b_pad8 >= 16:
        TB = min(TB, _round_up((b_pad8 + 1) // 2, 8))
    B_pad = _round_up(b_pad8, TB)
    if B_pad != B:
        x = jnp.pad(x, ((0, B_pad - B), (0, 0)))
    grid = (B_pad // TB,)

    def const_spec(shape):
        return pl.BlockSpec(shape, lambda i: tuple(0 for _ in shape))

    in_specs = [
        pl.BlockSpec((TB, H), lambda i: (i, 0)),   # x tile (pipelined)
        const_spec(wp.shape),                      # weights resident across steps
        const_spec(m1.shape),
        const_spec(m2.shape),
        const_spec(b1s.shape),
        const_spec(b2s.shape),
        const_spec(b3s.shape),
    ]
    out_specs = pl.BlockSpec((TB, Lp), lambda i: (i, 0))
    out_shape = jax.ShapeDtypeStruct((B_pad, Lp), jnp.float32)

    # --- VMEM budget (counts 2x weights: constant-index inputs are still
    #     double-buffered by the default pipeline) ------------------------------
    wbytes = (wp.size + m1.size + m2.size) * wd.itemsize + 3 * Lp * 4
    act_bytes = TB * H * wd.itemsize + TB * Lp * 4            # one x tile + one out tile
    vmem_needed = 2 * wbytes + 2 * act_bytes + (4 << 20)      # + scratch headroom
    vmem_limit = int(min(max(vmem_needed, 32 << 20), _vmem_cap_bytes()))

    # --- cost estimate (lets XLA overlap the custom call with surrounding glue)
    flops = int(2 * B_pad * (H * Lp + 2 * Lp * Lp))
    bytes_accessed = int(wbytes + B_pad * (H * wd.itemsize + Lp * 4))
    cost = pl.CostEstimate(flops=flops, transcendentals=0,
                           bytes_accessed=bytes_accessed)

    packed = pl.pallas_call(
        _head_kernel,
        out_shape=out_shape,
        grid=grid,
        in_specs=in_specs,
        out_specs=out_specs,
        compiler_params=pltpu.CompilerParams(
            dimension_semantics=("parallel",),
            vmem_limit_bytes=vmem_limit),
        cost_estimate=cost,
    )(x, wp, m1, m2, b1s, b2s, b3s)

    packed = packed[:B]
    return {
        'classifier_level_1': packed[:, :L1],
        'classifier_level_2': packed[:, L1:L1 + L2],
        'classifier_level_3': packed[:, L1 + L2:Ltot],
    }


# ---------------------------------------------------------------------------
# Parameters / forward / reference
# ---------------------------------------------------------------------------
def init_params(key, hidden_size, n1, n2, n3, vocab_size):
    """Deterministic synthetic parameters (shapes follow the module __init__)."""
    ks = jax.random.split(key, 12)
    s = 0.05

    def rnd(k, shape):
        return jax.random.normal(k, shape, dtype=jnp.float32) * s

    H = hidden_size
    return {
        # stand-in token embedding for the pretrained model
        'embed': rnd(ks[0], (vocab_size, H)),
        # self.hidden : Linear(H, H) stored as [in, out]
        'wh': rnd(ks[1], (H, H)),
        'bh': rnd(ks[2], (1, H)),
        # classifier_level_1 : Linear(H, n1)
        'w1': rnd(ks[3], (H, n1)),
        'b1': rnd(ks[4], (1, n1)),
        # classifier_level_2 : Linear(H + n1, n2), split along input dim
        'w2h': rnd(ks[5], (H, n2)),
        'w21': rnd(ks[6], (n1, n2)),
        'b2': rnd(ks[7], (1, n2)),
        # classifier_level_3 : Linear(H + n1 + n2, n3), split along input dim
        'w3h': rnd(ks[8], (H, n3)),
        'w31': rnd(ks[9], (n1, n3)),
        'w32': rnd(ks[10], (n2, n3)),
        'b3': rnd(ks[11], (1, n3)),
    }


def forward(input_ids, attention_mask, params, *, compute_dtype=jnp.bfloat16):
    """Full module forward. Pretrained-model stand-in is JAX glue (gather only
    the CLS position); the classifier head runs in the Pallas kernel."""
    # TODO(synk): replace with a real transformer encoder forward if needed.
    cls_vec = (params['embed'][input_ids[:, 0]]
               * attention_mask[:, 0, None].astype(jnp.float32))     # [B, H]
    return iddr_classifier_head(cls_vec, params, compute_dtype=compute_dtype)


def _reference(input_ids, attention_mask, params):
    """Pure-JAX reference for validation (same pretrained-model stand-in)."""
    cls_vec = (params['embed'][input_ids[:, 0]]
               * attention_mask[:, 0, None].astype(jnp.float32))
    h = cls_vec @ params['wh'] + params['bh']
    o1 = h @ params['w1'] + params['b1']
    o2 = (jnp.concatenate([h, o1], -1)
          @ jnp.concatenate([params['w2h'], params['w21']], 0) + params['b2'])
    o3 = (jnp.concatenate([h, o1, o2], -1)
          @ jnp.concatenate([params['w3h'], params['w31'], params['w32']], 0)
          + params['b3'])
    return {'classifier_level_1': o1, 'classifier_level_2': o2,
            'classifier_level_3': o3}


if __name__ == "__main__":
    key = jax.random.PRNGKey(0)

    # Small, module-consistent shapes.
    B, S, H = 2, 8, 32
    number_of_senses = {'level_1': 4, 'level_2': 8, 'level_3': 16}
    VOCAB = 64

    kparam, kids = jax.random.split(key)
    params = init_params(kparam, H,
                         number_of_senses['level_1'],
                         number_of_senses['level_2'],
                         number_of_senses['level_3'],
                         VOCAB)

    input_ids = jax.random.randint(kids, (B, S), 0, VOCAB, dtype=jnp.int32)
    attention_mask = jnp.ones((B, S), dtype=jnp.int32)

    ref = _reference(input_ids, attention_mask, params)

    # f32 path: tight check (only fp re-association from the hidden-Linear fold).
    logits_f32 = forward(input_ids, attention_mask, params,
                         compute_dtype=jnp.float32)
    jax.block_until_ready(logits_f32)
    for k in logits_f32:
        np.testing.assert_allclose(np.asarray(logits_f32[k]), np.asarray(ref[k]),
                                   rtol=1e-5, atol=1e-5)

    # bf16 path (default, MXU-native): relaxed tolerance vs the f32 reference.
    logits_bf16 = forward(input_ids, attention_mask, params)
    jax.block_until_ready(logits_bf16)
    for k in logits_bf16:
        np.testing.assert_allclose(np.asarray(logits_bf16[k]), np.asarray(ref[k]),
                                   rtol=3e-2, atol=3e-2)

    print("KERNEL_OK")
</pallas_src>

<mosaic_0001>
module attributes {stable_mosaic.version = 11 : i64} {
  func.func @_head_kernel(%arg0: i32, %arg1: memref<8x32xf32, #tpu.memory_space<vmem>>, %arg2: memref<32x128xf32, #tpu.memory_space<vmem>>, %arg3: memref<128x128xf32, #tpu.memory_space<vmem>>, %arg4: memref<128x128xf32, #tpu.memory_space<vmem>>, %arg5: memref<1x128xf32, #tpu.memory_space<vmem>>, %arg6: memref<1x128xf32, #tpu.memory_space<vmem>>, %arg7: memref<1x128xf32, #tpu.memory_space<vmem>>, %arg8: memref<8x128xf32, #tpu.memory_space<vmem>>) attributes {dimension_semantics = [#tpu.dimension_semantics<parallel>], iteration_bounds = array<i64: 1>, scalar_prefetch = 0 : i64, scratch_operands = 0 : i64, tpu.core_type = #tpu.core_type<tc>, window_params = [{transform_indices = @transform_0, window_bounds = array<i64: 8, 32>}, {pipeline_mode = #tpu.pipeline_mode<synchronous>, transform_indices = @transform_1, window_bounds = array<i64: 32, 128>}, {pipeline_mode = #tpu.pipeline_mode<synchronous>, transform_indices = @transform_2, window_bounds = array<i64: 128, 128>}, {pipeline_mode = #tpu.pipeline_mode<synchronous>, transform_indices = @transform_3, window_bounds = array<i64: 128, 128>}, {pipeline_mode = #tpu.pipeline_mode<synchronous>, transform_indices = @transform_4, window_bounds = array<i64: 1, 128>}, {pipeline_mode = #tpu.pipeline_mode<synchronous>, transform_indices = @transform_5, window_bounds = array<i64: 1, 128>}, {pipeline_mode = #tpu.pipeline_mode<synchronous>, transform_indices = @transform_6, window_bounds = array<i64: 1, 128>}, {transform_indices = @transform_7, window_bounds = array<i64: 8, 128>}]} {
    %c0 = arith.constant 0 : index
    %c0_0 = arith.constant 0 : index
    %0 = vector.load %arg1[%c0, %c0_0] : memref<8x32xf32, #tpu.memory_space<vmem>>, vector<8x32xf32>
    %c0_1 = arith.constant 0 : index
    %c0_2 = arith.constant 0 : index
    %1 = vector.load %arg2[%c0_1, %c0_2] : memref<32x128xf32, #tpu.memory_space<vmem>>, vector<32x128xf32>
    %cst = arith.constant dense<0.000000e+00> : vector<8x128xf32>
    %2 = tpu.matmul %0, %1, %cst {dimension_numbers = #tpu.dot_dimension_numbers<[1], [0], [0], [1], [0, 0, 1, 1], [], []>} : vector<8x32xf32>, vector<32x128xf32>, vector<8x128xf32> -> vector<8x128xf32>
    %c0_3 = arith.constant 0 : index
    %c0_4 = arith.constant 0 : index
    %3 = vector.load %arg5[%c0_3, %c0_4] : memref<1x128xf32, #tpu.memory_space<vmem>>, vector<1x128xf32>
    %4 = vector.broadcast %3 : vector<1x128xf32> to vector<8x128xf32>
    %5 = arith.addf %2, %4 : vector<8x128xf32>
    %c0_5 = arith.constant 0 : index
    %c0_6 = arith.constant 0 : index
    %6 = vector.load %arg3[%c0_5, %c0_6] : memref<128x128xf32, #tpu.memory_space<vmem>>, vector<128x128xf32>
    %cst_7 = arith.constant dense<0.000000e+00> : vector<8x128xf32>
    %7 = tpu.matmul %5, %6, %cst_7 {dimension_numbers = #tpu.dot_dimension_numbers<[1], [0], [0], [1], [0, 0, 1, 1], [], []>} : vector<8x128xf32>, vector<128x128xf32>, vector<8x128xf32> -> vector<8x128xf32>
    %8 = arith.addf %5, %7 : vector<8x128xf32>
    %c0_8 = arith.constant 0 : index
    %c0_9 = arith.constant 0 : index
    %9 = vector.load %arg6[%c0_8, %c0_9] : memref<1x128xf32, #tpu.memory_space<vmem>>, vector<1x128xf32>
    %10 = vector.broadcast %9 : vector<1x128xf32> to vector<8x128xf32>
    %11 = arith.addf %8, %10 : vector<8x128xf32>
    %c0_10 = arith.constant 0 : index
    %c0_11 = arith.constant 0 : index
    %12 = vector.load %arg4[%c0_10, %c0_11] : memref<128x128xf32, #tpu.memory_space<vmem>>, vector<128x128xf32>
    %cst_12 = arith.constant dense<0.000000e+00> : vector<8x128xf32>
    %13 = tpu.matmul %11, %12, %cst_12 {dimension_numbers = #tpu.dot_dimension_numbers<[1], [0], [0], [1], [0, 0, 1, 1], [], []>} : vector<8x128xf32>, vector<128x128xf32>, vector<8x128xf32> -> vector<8x128xf32>
    %14 = arith.addf %11, %13 : vector<8x128xf32>
    %c0_13 = arith.constant 0 : index
    %c0_14 = arith.constant 0 : index
    %15 = vector.load %arg7[%c0_13, %c0_14] : memref<1x128xf32, #tpu.memory_space<vmem>>, vector<1x128xf32>
    %16 = vector.broadcast %15 : vector<1x128xf32> to vector<8x128xf32>
    %17 = arith.addf %14, %16 : vector<8x128xf32>
    %c0_15 = arith.constant 0 : index
    %c0_16 = arith.constant 0 : index
    %18 = vector.load %arg8[%c0_15, %c0_16] : memref<8x128xf32, #tpu.memory_space<vmem>>, vector<8x128xf32>
    tpu.vector_store %arg8[%c0_15, %c0_16], %17 {strides = array<i32>} : memref<8x128xf32, #tpu.memory_space<vmem>>, vector<8x128xf32>,
    return
  }
  func.func @transform_0(%arg0: i32) -> (i32, i32) {
    %c0_i32 = arith.constant 0 : i32
    %c0_i32_0 = arith.constant 0 : i32
    return %arg0, %c0_i32 : i32, i32
  }
  func.func @transform_1(%arg0: i32) -> (i32, i32) {
    %c0_i32 = arith.constant 0 : i32
    %c0_i32_0 = arith.constant 0 : i32
    %c0_i32_1 = arith.constant 0 : i32
    return %c0_i32, %c0_i32_0 : i32, i32
  }
  func.func @transform_2(%arg0: i32) -> (i32, i32) {
    %c0_i32 = arith.constant 0 : i32
    %c0_i32_0 = arith.constant 0 : i32
    %c0_i32_1 = arith.constant 0 : i32
    return %c0_i32, %c0_i32_0 : i32, i32
  }
  func.func @transform_3(%arg0: i32) -> (i32, i32) {
    %c0_i32 = arith.constant 0 : i32
    %c0_i32_0 = arith.constant 0 : i32
    %c0_i32_1 = arith.constant 0 : i32
    return %c0_i32, %c0_i32_0 : i32, i32
  }
  func.func @transform_4(%arg0: i32) -> (i32, i32) {
    %c0_i32 = arith.constant 0 : i32
    %c0_i32_0 = arith.constant 0 : i32
    %c0_i32_1 = arith.constant 0 : i32
    return %c0_i32, %c0_i32_0 : i32, i32
  }
  func.func @transform_5(%arg0: i32) -> (i32, i32) {
    %c0_i32 = arith.constant 0 : i32
    %c0_i32_0 = arith.constant 0 : i32
    %c0_i32_1 = arith.constant 0 : i32
    return %c0_i32, %c0_i32_0 : i32, i32
  }
  func.func @transform_6(%arg0: i32) -> (i32, i32) {
    %c0_i32 = arith.constant 0 : i32
    %c0_i32_0 = arith.constant 0 : i32
    %c0_i32_1 = arith.constant 0 : i32
    return %c0_i32, %c0_i32_0 : i32, i32
  }
  func.func @transform_7(%arg0: i32) -> (i32, i32) {
    %c0_i32 = arith.constant 0 : i32
    %c0_i32_0 = arith.constant 0 : i32
    return %arg0, %c0_i32 : i32, i32
  }
}

</mosaic_0001>

<bundles_post_ra>
// kernel: tpu_custom_call.1
= control target key start
LH: loop header
LB: loop body
LE: loop exit
PB: predicated region body
PF: predicated region fallthrough
CT: control target
= control target key end

     0   :  { %12 = vsyncpa [#allocation3], 0  ;;  %s829_s0 = inlined_call_operand.hbm [shape: f32[8,32], index: 0, kind: input, shape index: {}]   ;;  %s830_s1 = inlined_call_operand.hbm [shape: f32[32,128], index: 1, kind: input, shape index: {}]   ;;  %s831_s2 = inlined_call_operand.hbm [shape: f32[128,128], index: 2, kind: input, shape index: {}]   ;;  %s832_s3 = inlined_call_operand.hbm [shape: f32[128,128], index: 3, kind: input, shape index: {}]   ;;  %s833_s4 = inlined_call_operand.vmem [shape: f32[1,128], index: 4, kind: input, shape index: {}]   ;;  %s834_s5 = inlined_call_operand.vmem [shape: f32[1,128], index: 5, kind: input, shape index: {}]   ;;  %s835_s6 = inlined_call_operand.vmem [shape: f32[1,128], index: 6, kind: input, shape index: {}]   ;;  %s836_s7 = inlined_call_operand.hbm [shape: f32[8,128], index: 7, kind: output, shape index: {}]  }
   0x1   :  { %13 = vsyncpa [#allocation6], 0 }
   0x2   :  { %14 = vsyncpa [#allocation9], 0 }
   0x3   :  { %15 = vsyncpa [#allocation4], 0  ;;  %s680_s24 = smov [#allocation5]   ;;  %s562_s28 = scalar_lea.hbm %s830_s1, 512 }
   0x4   :  { %s31_s25 = sshll.u32 %s680_s24, 4  ;;  %p563_p0 = scmp.ne.s32.totalorder %s830_s1, %s562_s28  ;;  %s32_s25 = int_to_ptr.vmem [resolvable:$true] %s31_s25 }
   0x5   :  { %p566_p1 = scmp.lt.u32.totalorder %s562_s28, %s830_s1 }
   0x7   :  { %p568_p2 = pnand %p566_p1, %p563_p0 }
   0x9   :  { %571 = shalt.err (!%p568_p2)
}
   0xa   :  { %s572_s10 = scalar_lea.vmem %s32_s25, 512  ;;  %p577_p4 = scmp.lt.s32.totalorder %s32_s25, %s32_s25 }
   0xb   :  { %p573_p3 = scmp.ne.s32.totalorder %s32_s25, %s572_s10  ;;  %p578_p5 = scmp.lt.s32.totalorder %s572_s10, %s572_s10 }
   0xd   :  { %p579_p6 = por %p578_p5, %p577_p4 }
   0xf   :  { %p580_p7 = pnand %p579_p6, %p573_p3 }
  0x11   :  { %583 = shalt.err (!%p580_p7)
}
  0x12   :  { %s681_s11 = smov 128   ;;  %s682_s12 = smov 8  }
  0x13   :  { %37 = dma.hbm_to_vmem [thread:$0]  %s830_s1, 512, %s32_s25, [#allocation6], %s681_s11, %s681_s11, %s682_s12  }
  0x14   :  { %s683_s15 = smov [#allocation2]   ;;  %s684_s17 = smov [#allocation7]  }
  0x15   :  { %s22_s16 = sshll.u32 %s683_s15, 4  ;;  %s43_s18 = sshll.u32 %s684_s17, 4  ;;  %s23_s16 = int_to_ptr.vmem [resolvable:$true] %s22_s16  ;;  %s44_s18 = int_to_ptr.vmem [resolvable:$true] %s43_s18 }
  0x16   :  { %s584_s21 = scalar_lea.hbm %s829_s0, 128 }
  0x17   :  { %p585_p8 = scmp.ne.s32.totalorder %s829_s0, %s584_s21  ;;  %p588_p9 = scmp.lt.u32.totalorder %s584_s21, %s829_s0 }
  0x19   :  { %p590_p10 = pnand %p588_p9, %p585_p8 }
  0x1b   :  { %593 = shalt.err (!%p590_p10)
}
  0x1c   :  { %s594_s1 = scalar_lea.vmem %s23_s16, 128  ;;  %p599_p12 = scmp.lt.s32.totalorder %s23_s16, %s23_s16 }
  0x1d   :  { %p595_p11 = scmp.ne.s32.totalorder %s23_s16, %s594_s1  ;;  %p600_p13 = scmp.lt.s32.totalorder %s594_s1, %s594_s1 }
  0x1f   :  { %p601_p0 = por %p600_p13, %p599_p12 }
  0x21   :  { %p602_p1 = pnand %p601_p0, %p595_p11 }
  0x23   :  { %605 = shalt.err (!%p602_p1)
}
  0x24   :  { %25 = dma.hbm_to_vmem [thread:$0]  %s829_s0, 128, %s23_s16, [#allocation3]  }
  0x25   :  { %s606_s30 = scalar_lea.hbm %s831_s2, 2048 }
  0x26   :  { %p607_p2 = scmp.ne.s32.totalorder %s831_s2, %s606_s30  ;;  %p610_p3 = scmp.lt.u32.totalorder %s606_s30, %s831_s2 }
  0x28   :  { %p612_p4 = pnand %p610_p3, %p607_p2 }
  0x2a   :  { %615 = shalt.err (!%p612_p4)
}
  0x2b   :  { %s616_s14 = scalar_lea.vmem %s44_s18, 2048  ;;  %p621_p6 = scmp.lt.s32.totalorder %s44_s18, %s44_s18 }
  0x2c   :  { %p617_p5 = scmp.ne.s32.totalorder %s44_s18, %s616_s14  ;;  %p622_p7 = scmp.lt.s32.totalorder %s616_s14, %s616_s14 }
  0x2e   :  { %p623_p8 = por %p622_p7, %p621_p6 }
  0x30   :  { %p624_p9 = pnand %p623_p8, %p617_p5 }
  0x32   :  { %627 = shalt.err (!%p624_p9)
}
  0x33   :  { %49 = dma.hbm_to_vmem [thread:$0]  %s831_s2, 2048, %s44_s18, [#allocation6], %s681_s11, %s681_s11, %s682_s12  }
  0x34   :  { %s685_s16 = smov [#allocation8]   ;;  %s628_s21 = scalar_lea.hbm %s832_s3, 2048 }
  0x35   :  { %s55_s17 = sshll.u32 %s685_s16, 4  ;;  %p629_p10 = scmp.ne.s32.totalorder %s832_s3, %s628_s21  ;;  %s56_s17 = int_to_ptr.vmem [resolvable:$true] %s55_s17 }
  0x36   :  { %p632_p11 = scmp.lt.u32.totalorder %s628_s21, %s832_s3 }
  0x38   :  { %p634_p12 = pnand %p632_p11, %p629_p10 }
  0x3a   :  { %637 = shalt.err (!%p634_p12)
}
  0x3b   :  { %s638_s1 = scalar_lea.vmem %s56_s17, 2048  ;;  %p643_p0 = scmp.lt.s32.totalorder %s56_s17, %s56_s17 }
  0x3c   :  { %p639_p13 = scmp.ne.s32.totalorder %s56_s17, %s638_s1  ;;  %p644_p1 = scmp.lt.s32.totalorder %s638_s1, %s638_s1 }
  0x3e   :  { %p645_p2 = por %p644_p1, %p643_p0 }
  0x40   :  { %p646_p3 = pnand %p645_p2, %p639_p13 }
  0x42   :  { %649 = shalt.err (!%p646_p3)
}
  0x43   :  { %61 = dma.hbm_to_vmem [thread:$0]  %s832_s3, 2048, %s56_s17, [#allocation9], %s681_s11, %s681_s11, %s682_s12  }
  0x44   :  { %672 = dma.done.wait [#allocation3], 128  }
  0x45   :  { %673 = vsyncadd [#allocation3], 4294967168 }
  0x46   :  { %674 = dma.done.wait [#allocation6], 2560  }
  0x47   :  { %675 = vsyncadd [#allocation6], 4294964736 }
  0x48   :  { %676 = dma.done.wait [#allocation9], 2048  }
  0x49   :  { %677 = vsyncadd [#allocation9], 4294965248  ;;  %v686_v0 = vmov 0.0|0.0   ;;  %vm687_vm0 = vmmov 0   ;;  %v688_v1 = vmov 0.0   ;;  %v81_v2 = vld [vmem:[#allocation5] sm:$0xff] }
  0x4a   :  { %498 = vmatprep.subr.bf16.mxu0 %v686_v0  ;;  %425 = vmatprep.mubr.msk.f32.mxu0 %vm687_vm0, %v688_v1  ;;  %v82_v3 = vld [vmem:[#allocation5 + $0x8] sm:$0xff]  ;;  %v83_v4 = vld [vmem:[#allocation5 + $0x10] sm:$0xff]  ;;  %v84_v6 = vld [vmem:[#allocation5 + $0x18] sm:$0xff]  ;;  %vm92_vm1 = vcmask 261120   ;;  %s689_s28 = smov [#allocation10]  }
  0x4b   :  { %504 = vmatprep.subr.bf16.mxu1 %v686_v0  ;;  %460 = vmatprep.mubr.msk.f32.mxu1 %vm687_vm0, %v688_v1  ;;  %v499_v5 = vpack.c.bf16 %v82_v3, %v81_v2  ;;  %v166_v7 = vld [vmem:[#allocation7] sm:$0xff]  ;;  %v167_v8 = vld [vmem:[#allocation7 + $0x8] sm:$0xff]  ;;  %v168_v9 = vld [vmem:[#allocation7 + $0x10] sm:$0xff]  ;;  %v502_v11 = vpack.c.bf16 %v84_v6, %v83_v4  ;;  %s363_s29 = sshll.u32 %s689_s28, 4  ;;  %s364_s29 = int_to_ptr.vmem [resolvable:$true] %s363_s29 }
  0x4c   :  { %v169_v10 = vld [vmem:[#allocation7 + $0x18] sm:$0xff]  ;;  %v505_v12 = vpack.c.bf16 %v167_v8, %v166_v7  ;;  %v170_v14 = vld [vmem:[#allocation7 + $0x20] sm:$0xff]  ;;  %v171_v15 = vld [vmem:[#allocation7 + $0x28] sm:$0xff]  ;;  %s650_s30 = scalar_lea.vmem %s364_s29, 128  ;;  %p655_p5 = scmp.lt.s32.totalorder %s364_s29, %s364_s29 }
  0x4d   :  { %500 = vmatpush3.bf16.msra.mxu0 %v499_v5  ;;  %v508_v13 = vpack.c.bf16 %v169_v10, %v168_v9  ;;  %v80_v16 = vld [vmem:[#allocation2] sm:$0xff]  ;;  %v511_v17 = vpack.c.bf16 %v171_v15, %v170_v14  ;;  %v172_v18 = vld [vmem:[#allocation7 + $0x30] sm:$0xff]  ;;  %v174_v21 = vld [vmem:[#allocation7 + $0x40] sm:$0xff]  ;;  %p651_p4 = scmp.ne.s32.totalorder %s364_s29, %s650_s30  ;;  %p656_p6 = scmp.lt.s32.totalorder %s650_s30, %s650_s30 }
  0x4e   :  { %501 = vmatprep.subr.bf16.mxu0 %v686_v0  ;;  %506 = vmatpush3.bf16.msra.mxu1 %v505_v12  ;;  %v173_v19 = vld [vmem:[#allocation7 + $0x38] sm:$0xff]  ;;  %v175_v22 = vld [vmem:[#allocation7 + $0x48] sm:$0xff]  ;;  %v176_v24 = vld [vmem:[#allocation7 + $0x50] sm:$0xff] }
  0x4f   :  { %507 = vmatprep.subr.bf16.mxu1 %v686_v0  ;;  %v514_v20 = vpack.c.bf16 %v173_v19, %v172_v18  ;;  %v517_v23 = vpack.c.bf16 %v175_v22, %v174_v21  ;;  %v177_v25 = vld [vmem:[#allocation7 + $0x58] sm:$0xff]  ;;  %v178_v27 = vld [vmem:[#allocation7 + $0x60] sm:$0xff]  ;;  %v179_v28 = vld [vmem:[#allocation7 + $0x68] sm:$0xff]  ;;  %p657_p7 = por %p656_p6, %p655_p5 }
  0x50   :  { %v520_v26 = vpack.c.bf16 %v177_v25, %v176_v24  ;;  %v523_v29 = vpack.c.bf16 %v179_v28, %v178_v27  ;;  %v180_v30 = vld [vmem:[#allocation7 + $0x70] sm:$0xff]  ;;  %v181_v31 = vld [vmem:[#allocation7 + $0x78] sm:$0xff]  ;;  %v261_v33 = vld [vmem:[#allocation8] sm:$0xff] }
  0x51   :  { %503 = vmatpush3.bf16.msra.mxu0 %v502_v11  ;;  %v526_v32 = vpack.c.bf16 %v181_v31, %v180_v30  ;;  %v262_v34 = vld [vmem:[#allocation8 + $0x8] sm:$0xff]  ;;  %v263_v35 = vld [vmem:[#allocation8 + $0x10] sm:$0xff]  ;;  %v264_v37 = vld [vmem:[#allocation8 + $0x18] sm:$0xff]  ;;  %p658_p8 = pnand %p657_p7, %p651_p4 }
  0x52   :  { %528 = vmatprep.subr.bf16.mxu0 %v686_v0  ;;  %509 = vmatpush3.bf16.msra.mxu1 %v508_v13  ;;  %v529_v36 = vpack.c.bf16 %v262_v34, %v261_v33  ;;  %v532_v38 = vpack.c.bf16 %v264_v37, %v263_v35  ;;  %v265_v39 = vld [vmem:[#allocation8 + $0x20] sm:$0xff]  ;;  %v266_v40 = vld [vmem:[#allocation8 + $0x28] sm:$0xff]  ;;  %v267_v42 = vld [vmem:[#allocation8 + $0x30] sm:$0xff] }
  0x53   :  { %510 = vmatprep.subr.bf16.mxu1 %v686_v0  ;;  %v535_v41 = vpack.c.bf16 %v266_v40, %v265_v39  ;;  %v268_v43 = vld [vmem:[#allocation8 + $0x38] sm:$0xff]  ;;  %v269_v45 = vld [vmem:[#allocation8 + $0x40] sm:$0xff]  ;;  %v270_v46 = vld [vmem:[#allocation8 + $0x48] sm:$0xff] }
  0x54   :  { %426 = vmatmul.mubr.msk.f32.vlgmr.msra.gmra.mrb[0].mxu0 %vm92_vm1, %v80_v16  ;;  %v538_v44 = vpack.c.bf16 %v268_v43, %v267_v42  ;;  %v541_v47 = vpack.c.bf16 %v270_v46, %v269_v45  ;;  %v271_v48 = vld [vmem:[#allocation8 + $0x50] sm:$0xff]  ;;  %v272_v49 = vld [vmem:[#allocation8 + $0x58] sm:$0xff]  ;;  %v273_v51 = vld [vmem:[#allocation8 + $0x60] sm:$0xff] }
  0x55   :  { %495 = vmatprep.mubr.msk.f32.mxu0 %vm687_vm0, %v688_v1  ;;  %530 = vmatpush3.bf16.msra.mxu0 %v529_v36  ;;  %v544_v50 = vpack.c.bf16 %v272_v49, %v271_v48  ;;  %v274_v52 = vld [vmem:[#allocation8 + $0x68] sm:$0xff]  ;;  %v374_v54 = vld [vmem:[%s833_s4] ss:$0 sm:$0xff]  ;;  %v275_v58 = vld [vmem:[#allocation8 + $0x70] sm:$0xff] }
  0x56   :  { %512 = vmatpush3.bf16.msra.mxu1 %v511_v17  ;;  %531 = vmatprep.subr.bf16.mxu0 %v686_v0  ;;  %v547_v53 = vpack.c.bf16 %v274_v52, %v273_v51  ;;  %v276_v59 = vld [vmem:[#allocation8 + $0x78] sm:$0xff] }
  0x57   :  { %513 = vmatprep.subr.bf16.mxu1 %v686_v0  ;;  %v550_v60 = vpack.c.bf16 %v276_v59, %v275_v58  ;;  %v376_v62 = vld [vmem:[%s834_s5] ss:$0 sm:$0xff] }
  0x58   :  { %v377_v3 = vld [vmem:[%s835_s6] ss:$0 sm:$0xff] }
  0x59   :  { %533 = vmatpush3.bf16.msra.mxu0 %v532_v38 }
  0x5a   :  { %515 = vmatpush3.bf16.msra.mxu1 %v514_v20  ;;  %534 = vmatprep.subr.bf16.mxu0 %v686_v0 }
  0x5b   :  { %516 = vmatprep.subr.bf16.mxu1 %v686_v0 }
  0x5d   :  { %536 = vmatpush3.bf16.msra.mxu0 %v535_v41 }
  0x5e   :  { %518 = vmatpush3.bf16.msra.mxu1 %v517_v23  ;;  %537 = vmatprep.subr.bf16.mxu0 %v686_v0 }
  0x5f   :  { %519 = vmatprep.subr.bf16.mxu1 %v686_v0 }
  0x61   :  { %539 = vmatpush3.bf16.msra.mxu0 %v538_v44 }
  0x62   :  { %521 = vmatpush3.bf16.msra.mxu1 %v520_v26  ;;  %540 = vmatprep.subr.bf16.mxu0 %v686_v0 }
  0x63   :  { %522 = vmatprep.subr.bf16.mxu1 %v686_v0 }
  0x65   :  { %542 = vmatpush3.bf16.msra.mxu0 %v541_v47 }
  0x66   :  { %524 = vmatpush3.bf16.msra.mxu1 %v523_v29  ;;  %543 = vmatprep.subr.bf16.mxu0 %v686_v0 }
  0x67   :  { %525 = vmatprep.subr.bf16.mxu1 %v686_v0 }
  0x69   :  { %545 = vmatpush3.bf16.msra.mxu0 %v544_v50 }
  0x6a   :  { %527 = vmatpush3.bf16.msra.mxu1 %v526_v32  ;;  %546 = vmatprep.subr.bf16.mxu0 %v686_v0 }
  0x6d   :  { %548 = vmatpush3.bf16.msra.mxu0 %v547_v53 }
  0x6e   :  { %549 = vmatprep.subr.bf16.mxu0 %v686_v0 }
  0x71   :  { %551 = vmatpush3.bf16.msra.mxu0 %v550_v60 }
 0x127   :  { %v162_v55 = vpop.f32.mrb[0].mxu0 }
 0x128   :  { %v163_v56 = vadd.f32 %v374_v54, %v162_v55  ;;  %v427_v57 = vpop.f32.mrb[1].mxu0 }
 0x12a   :  { %461 = vmatmul.mubr.f32.vlgmr.msra.gmra.mrb[0].mxu1 %v163_v56 }
 0x1fd   :  { %v248_v61 = vpop.f32.mrb[0].mxu1 }
 0x1fe   :  { %v252_v63 = vadd.f32 %v248_v61, %v163_v56  ;;  %v462_v1 = vpop.f32.mrb[1].mxu1 }
 0x200   :  { %v260_v0 = vadd.f32 %v376_v62, %v252_v63 }
 0x202   :  { %496 = vmatmul.mubr.f32.vlgmr.msra.gmra.mrb[2].mxu0 %v260_v0 }
 0x2d5   :  { %v343_v2 = vpop.f32.mrb[2].mxu0 }
 0x2d6   :  { %v347_v4 = vadd.f32 %v343_v2, %v260_v0  ;;  %v497_v5 = vpop.f32.mrb[3].mxu0 }
 0x2d8   :  { %v355_v6 = vadd.f32 %v377_v3, %v347_v4 }
 0x2da   :  { %356 = vst [vmem:[#allocation10] sm:$0xff] %v355_v6 }
 0x2db   :  { %661 = shalt.err (!%p658_p8)
}
 0x2dc   :  { %s662_s9 = scalar_lea.hbm %s836_s7, 128 }
 0x2dd   :  { %p663_p9 = scmp.ne.s32.totalorder %s836_s7, %s662_s9  ;;  %p666_p10 = scmp.lt.u32.totalorder %s662_s9, %s836_s7 }
 0x2df   :  { %p668_p11 = pnand %p666_p10, %p663_p9 }
 0x2e1   :  { %671 = shalt.err (!%p668_p11)
}
 0x2e2   :  { %366 = dma.vmem_to_hbm [thread:$0]  %s364_s29, 128, %s836_s7, [#allocation4]  }
 0x2e3   :  { %678 = dma.done.wait [#allocation4], 128  }
 0x2e4   :  { %679 = vsyncadd [#allocation4], 4294967168 }
 0x2e5   :  { %370 = vsyncpa [#allocation3], 1 }
 0x2e6   :  { %371 = vsyncpa [#allocation6], 1 }
 0x2e7   :  { %372 = vsyncpa [#allocation9], 1 }
 0x2e8   :  { %373 = vsyncpa [#allocation4], 1 }

</bundles_post_ra>
